<compile_context>
chip_gen: v7x
topology: tpu7x:2x2x1
jax: 0.10.0
libtpu: 0.0.40
codegen_flags: <defaults>
</compile_context>

<pallas_src>
import jax
import jax.numpy as jnp
import numpy as np
from jax.experimental import pallas as pl
from jax.experimental.pallas import tpu as pltpu


def _ae_kernel(x_ref,
               w1_ref, b1_ref,
               w2_ref, b2_ref,
               w3_ref, b3_ref,
               w4_ref, b4_ref,
               o_ref):
    """Fused 4-layer MLP for one batch tile.

    x is f32 in HBM, cast to bf16 here; weights arrive bf16; accumulation,
    bias add and activations are f32; output stored as o_ref.dtype (bf16).
    """
    x = x_ref[...].astype(jnp.bfloat16)

    # encoder
    h1 = jnp.dot(x, w1_ref[...], preferred_element_type=jnp.float32) + b1_ref[...]
    h1 = jnp.maximum(h1, 0.0).astype(jnp.bfloat16)                    # ReLU
    h2 = jnp.dot(h1, w2_ref[...], preferred_element_type=jnp.float32) + b2_ref[...]
    h2 = jnp.maximum(h2, 0.0).astype(jnp.bfloat16)                    # ReLU

    # decoder
    h3 = jnp.dot(h2, w3_ref[...], preferred_element_type=jnp.float32) + b3_ref[...]
    h3 = jnp.maximum(h3, 0.0).astype(jnp.bfloat16)                    # ReLU
    z = jnp.dot(h3, w4_ref[...], preferred_element_type=jnp.float32) + b4_ref[...]

    # Sigmoid: exp + approx reciprocal both run on the EUP (keeps VALU free).
    o_ref[...] = pl.reciprocal(1.0 + jnp.exp(-z), approx=True).astype(o_ref.dtype)


def _round_up(n, m):
    return ((n + m - 1) // m) * m


def _pick_block_b(B, block_b):
    """Batch tile: multiple of 8, <= round_up(B,8), and (when B allows) an
    even grid with >= 2 steps so both v7x TensorCores get balanced work."""
    block_b = max(8, (block_b // 8) * 8)
    block_b = min(block_b, _round_up(B, 8))
    if B > 8:
        nsteps = pl.cdiv(B, block_b)
        if nsteps < 2 or nsteps % 2:
            nsteps = max(2, nsteps + (nsteps % 2))
            block_b = max(8, _round_up(pl.cdiv(B, nsteps), 8))
    return block_b


def autoencoder_forward(x, params, *, block_b=2048, out_dtype=jnp.bfloat16):
    """x: (B, input_dim) float32.  params: weights stored (in, out), biases (1, out).

    Returns (B, input_dim) in `out_dtype` (default bf16 — halves writeback
    traffic; pass jnp.float32 if the consumer needs full precision).
    """
    B, D = x.shape

    # Tiny weights: one-time bf16 cast; biases stay f32.
    w1 = params["w1"].astype(jnp.bfloat16)   # (D, 64)
    w2 = params["w2"].astype(jnp.bfloat16)   # (64, 32)
    w3 = params["w3"].astype(jnp.bfloat16)   # (32, 64)
    w4 = params["w4"].astype(jnp.bfloat16)   # (64, D)
    b1, b2, b3, b4 = params["b1"], params["b2"], params["b3"], params["b4"]

    block_b = _pick_block_b(B, block_b)
    grid = (pl.cdiv(B, block_b),)            # ragged edge block is masked by Pallas

    full = lambda a: pl.BlockSpec(a.shape, lambda i: (0, 0))

    return pl.pallas_call(
        _ae_kernel,
        out_shape=jax.ShapeDtypeStruct((B, D), out_dtype),
        grid=grid,
        in_specs=[
            pl.BlockSpec((block_b, D), lambda i: (i, 0)),
            full(w1), full(b1),
            full(w2), full(b2),
            full(w3), full(b3),
            full(w4), full(b4),
        ],
        out_specs=pl.BlockSpec((block_b, D), lambda i: (i, 0)),
        compiler_params=pltpu.CompilerParams(
            dimension_semantics=("parallel",)),
    )(x, w1, b1, w2, b2, w3, b3, w4, b4)


def init_params(key, input_dim=50):
    """Deterministic init mirroring nn.Linear (weights stored as (in, out))."""
    ks = jax.random.split(key, 8)

    def linear(kw, kb, fan_in, fan_out):
        # PyTorch default: U(-1/sqrt(fan_in), 1/sqrt(fan_in))
        bound = 1.0 / np.sqrt(fan_in)
        w = jax.random.uniform(kw, (fan_in, fan_out), jnp.float32, -bound, bound)
        b = jax.random.uniform(kb, (1, fan_out), jnp.float32, -bound, bound)
        return w, b

    w1, b1 = linear(ks[0], ks[1], input_dim, 64)
    w2, b2 = linear(ks[2], ks[3], 64, 32)
    w3, b3 = linear(ks[4], ks[5], 32, 64)
    w4, b4 = linear(ks[6], ks[7], 64, input_dim)
    return dict(w1=w1, b1=b1, w2=w2, b2=b2, w3=w3, b3=b3, w4=w4, b4=b4)


def _reference(x, p):
    h = jnp.maximum(x @ p["w1"] + p["b1"], 0.0)
    h = jnp.maximum(h @ p["w2"] + p["b2"], 0.0)
    h = jnp.maximum(h @ p["w3"] + p["b3"], 0.0)
    return jax.nn.sigmoid(h @ p["w4"] + p["b4"])


if __name__ == "__main__":
    input_dim = 50
    key = jax.random.PRNGKey(0)
    k_x, k_p = jax.random.split(key)
    params = init_params(k_p, input_dim)

    # Case 1: batch divisible by the chosen tile (grid = 2, both v7x TCs busy).
    x_even = jax.random.uniform(k_x, (256, input_dim), jnp.float32)
    out_even = jax.block_until_ready(autoencoder_forward(x_even, params))
    ref_even = _reference(x_even, params)
    # bf16 operands/output + approx reciprocal -> loosened tolerance.
    np.testing.assert_allclose(np.asarray(out_even, dtype=np.float32),
                               np.asarray(ref_even), rtol=0.0, atol=2e-2)

    # Case 2: ragged batch (exercises the masked edge block, no padding copies).
    x_odd = jax.random.uniform(k_x, (250, input_dim), jnp.float32)
    out_odd = jax.block_until_ready(autoencoder_forward(x_odd, params))
    ref_odd = _reference(x_odd, params)
    np.testing.assert_allclose(np.asarray(out_odd, dtype=np.float32),
                               np.asarray(ref_odd), rtol=0.0, atol=2e-2)

    print("KERNEL_OK")
</pallas_src>

<mosaic_0001>
module attributes {stable_mosaic.version = 11 : i64} {
  func.func @_ae_kernel(%arg0: i32, %arg1: memref<128x50xf32, #tpu.memory_space<vmem>>, %arg2: memref<50x64xbf16, #tpu.memory_space<vmem>>, %arg3: memref<1x64xf32, #tpu.memory_space<vmem>>, %arg4: memref<64x32xbf16, #tpu.memory_space<vmem>>, %arg5: memref<1x32xf32, #tpu.memory_space<vmem>>, %arg6: memref<32x64xbf16, #tpu.memory_space<vmem>>, %arg7: memref<1x64xf32, #tpu.memory_space<vmem>>, %arg8: memref<64x50xbf16, #tpu.memory_space<vmem>>, %arg9: memref<1x50xf32, #tpu.memory_space<vmem>>, %arg10: memref<128x50xbf16, #tpu.memory_space<vmem>>) attributes {dimension_semantics = [#tpu.dimension_semantics<parallel>], iteration_bounds = array<i64: 2>, scalar_prefetch = 0 : i64, scratch_operands = 0 : i64, tpu.core_type = #tpu.core_type<tc>, window_params = [{transform_indices = @transform_0, window_bounds = array<i64: 128, 50>}, {pipeline_mode = #tpu.pipeline_mode<synchronous>, transform_indices = @transform_1, window_bounds = array<i64: 50, 64>}, {pipeline_mode = #tpu.pipeline_mode<synchronous>, transform_indices = @transform_2, window_bounds = array<i64: 1, 64>}, {pipeline_mode = #tpu.pipeline_mode<synchronous>, transform_indices = @transform_3, window_bounds = array<i64: 64, 32>}, {pipeline_mode = #tpu.pipeline_mode<synchronous>, transform_indices = @transform_4, window_bounds = array<i64: 1, 32>}, {pipeline_mode = #tpu.pipeline_mode<synchronous>, transform_indices = @transform_5, window_bounds = array<i64: 32, 64>}, {pipeline_mode = #tpu.pipeline_mode<synchronous>, transform_indices = @transform_6, window_bounds = array<i64: 1, 64>}, {pipeline_mode = #tpu.pipeline_mode<synchronous>, transform_indices = @transform_7, window_bounds = array<i64: 64, 50>}, {pipeline_mode = #tpu.pipeline_mode<synchronous>, transform_indices = @transform_8, window_bounds = array<i64: 1, 50>}, {transform_indices = @transform_9, window_bounds = array<i64: 128, 50>}]} {
    %c0 = arith.constant 0 : index
    %c0_0 = arith.constant 0 : index
    %0 = vector.load %arg1[%c0, %c0_0] : memref<128x50xf32, #tpu.memory_space<vmem>>, vector<128x50xf32>
    %1 = arith.truncf %0 : vector<128x50xf32> to vector<128x50xbf16>
    %c0_1 = arith.constant 0 : index
    %c0_2 = arith.constant 0 : index
    %2 = vector.load %arg2[%c0_1, %c0_2] : memref<50x64xbf16, #tpu.memory_space<vmem>>, vector<50x64xbf16>
    %cst = arith.constant dense<0.000000e+00> : vector<128x64xf32>
    %3 = tpu.matmul %1, %2, %cst {dimension_numbers = #tpu.dot_dimension_numbers<[1], [0], [0], [1], [0, 0, 1, 1], [], []>} : vector<128x50xbf16>, vector<50x64xbf16>, vector<128x64xf32> -> vector<128x64xf32>
    %c0_3 = arith.constant 0 : index
    %c0_4 = arith.constant 0 : index
    %4 = vector.load %arg3[%c0_3, %c0_4] : memref<1x64xf32, #tpu.memory_space<vmem>>, vector<1x64xf32>
    %5 = vector.broadcast %4 : vector<1x64xf32> to vector<128x64xf32>
    %6 = arith.addf %3, %5 : vector<128x64xf32>
    %cst_5 = arith.constant 0.000000e+00 : f32
    %7 = vector.broadcast %cst_5 : f32 to vector<128x64xf32>
    %8 = arith.maximumf %6, %7 : vector<128x64xf32>
    %9 = arith.truncf %8 : vector<128x64xf32> to vector<128x64xbf16>
    %c0_6 = arith.constant 0 : index
    %c0_7 = arith.constant 0 : index
    %10 = vector.load %arg4[%c0_6, %c0_7] : memref<64x32xbf16, #tpu.memory_space<vmem>>, vector<64x32xbf16>
    %cst_8 = arith.constant dense<0.000000e+00> : vector<128x32xf32>
    %11 = tpu.matmul %9, %10, %cst_8 {dimension_numbers = #tpu.dot_dimension_numbers<[1], [0], [0], [1], [0, 0, 1, 1], [], []>} : vector<128x64xbf16>, vector<64x32xbf16>, vector<128x32xf32> -> vector<128x32xf32>
    %c0_9 = arith.constant 0 : index
    %c0_10 = arith.constant 0 : index
    %12 = vector.load %arg5[%c0_9, %c0_10] : memref<1x32xf32, #tpu.memory_space<vmem>>, vector<1x32xf32>
    %13 = vector.broadcast %12 : vector<1x32xf32> to vector<128x32xf32>
    %14 = arith.addf %11, %13 : vector<128x32xf32>
    %cst_11 = arith.constant 0.000000e+00 : f32
    %15 = vector.broadcast %cst_11 : f32 to vector<128x32xf32>
    %16 = arith.maximumf %14, %15 : vector<128x32xf32>
    %17 = arith.truncf %16 : vector<128x32xf32> to vector<128x32xbf16>
    %c0_12 = arith.constant 0 : index
    %c0_13 = arith.constant 0 : index
    %18 = vector.load %arg6[%c0_12, %c0_13] : memref<32x64xbf16, #tpu.memory_space<vmem>>, vector<32x64xbf16>
    %cst_14 = arith.constant dense<0.000000e+00> : vector<128x64xf32>
    %19 = tpu.matmul %17, %18, %cst_14 {dimension_numbers = #tpu.dot_dimension_numbers<[1], [0], [0], [1], [0, 0, 1, 1], [], []>} : vector<128x32xbf16>, vector<32x64xbf16>, vector<128x64xf32> -> vector<128x64xf32>
    %c0_15 = arith.constant 0 : index
    %c0_16 = arith.constant 0 : index
    %20 = vector.load %arg7[%c0_15, %c0_16] : memref<1x64xf32, #tpu.memory_space<vmem>>, vector<1x64xf32>
    %21 = vector.broadcast %20 : vector<1x64xf32> to vector<128x64xf32>
    %22 = arith.addf %19, %21 : vector<128x64xf32>
    %cst_17 = arith.constant 0.000000e+00 : f32
    %23 = vector.broadcast %cst_17 : f32 to vector<128x64xf32>
    %24 = arith.maximumf %22, %23 : vector<128x64xf32>
    %25 = arith.truncf %24 : vector<128x64xf32> to vector<128x64xbf16>
    %c0_18 = arith.constant 0 : index
    %c0_19 = arith.constant 0 : index
    %26 = vector.load %arg8[%c0_18, %c0_19] : memref<64x50xbf16, #tpu.memory_space<vmem>>, vector<64x50xbf16>
    %cst_20 = arith.constant dense<0.000000e+00> : vector<128x50xf32>
    %27 = tpu.matmul %25, %26, %cst_20 {dimension_numbers = #tpu.dot_dimension_numbers<[1], [0], [0], [1], [0, 0, 1, 1], [], []>} : vector<128x64xbf16>, vector<64x50xbf16>, vector<128x50xf32> -> vector<128x50xf32>
    %c0_21 = arith.constant 0 : index
    %c0_22 = arith.constant 0 : index
    %28 = vector.load %arg9[%c0_21, %c0_22] : memref<1x50xf32, #tpu.memory_space<vmem>>, vector<1x50xf32>
    %29 = vector.broadcast %28 : vector<1x50xf32> to vector<128x50xf32>
    %30 = arith.addf %27, %29 : vector<128x50xf32>
    %cst_23 = arith.constant 0.000000e+00 : f32
    %31 = vector.broadcast %cst_23 : f32 to vector<128x50xf32>
    %32 = arith.subf %31, %30 : vector<128x50xf32>
    %33 = math.exp %32 : vector<128x50xf32>
    %cst_24 = arith.constant 1.000000e+00 : f32
    %34 = vector.broadcast %cst_24 : f32 to vector<128x50xf32>
    %35 = arith.addf %34, %33 : vector<128x50xf32>
    %36 = tpu.reciprocal %35 {approx = true} : vector<128x50xf32> -> vector<128x50xf32>
    %37 = arith.truncf %36 : vector<128x50xf32> to vector<128x50xbf16>
    %c0_25 = arith.constant 0 : index
    %c0_26 = arith.constant 0 : index
    %38 = vector.load %arg10[%c0_25, %c0_26] : memref<128x50xbf16, #tpu.memory_space<vmem>>, vector<128x50xbf16>
    tpu.vector_store %arg10[%c0_25, %c0_26], %37 {strides = array<i32>} : memref<128x50xbf16, #tpu.memory_space<vmem>>, vector<128x50xbf16>,
    return
  }
  func.func @transform_0(%arg0: i32) -> (i32, i32) {
    %c0_i32 = arith.constant 0 : i32
    %c0_i32_0 = arith.constant 0 : i32
    return %arg0, %c0_i32 : i32, i32
  }
  func.func @transform_1(%arg0: i32) -> (i32, i32) {
    %c0_i32 = arith.constant 0 : i32
    %c0_i32_0 = arith.constant 0 : i32
    %c0_i32_1 = arith.constant 0 : i32
    return %c0_i32, %c0_i32_0 : i32, i32
  }
  func.func @transform_2(%arg0: i32) -> (i32, i32) {
    %c0_i32 = arith.constant 0 : i32
    %c0_i32_0 = arith.constant 0 : i32
    %c0_i32_1 = arith.constant 0 : i32
    return %c0_i32, %c0_i32_0 : i32, i32
  }
  func.func @transform_3(%arg0: i32) -> (i32, i32) {
    %c0_i32 = arith.constant 0 : i32
    %c0_i32_0 = arith.constant 0 : i32
    %c0_i32_1 = arith.constant 0 : i32
    return %c0_i32, %c0_i32_0 : i32, i32
  }
  func.func @transform_4(%arg0: i32) -> (i32, i32) {
    %c0_i32 = arith.constant 0 : i32
    %c0_i32_0 = arith.constant 0 : i32
    %c0_i32_1 = arith.constant 0 : i32
    return %c0_i32, %c0_i32_0 : i32, i32
  }
  func.func @transform_5(%arg0: i32) -> (i32, i32) {
    %c0_i32 = arith.constant 0 : i32
    %c0_i32_0 = arith.constant 0 : i32
    %c0_i32_1 = arith.constant 0 : i32
    return %c0_i32, %c0_i32_0 : i32, i32
  }
  func.func @transform_6(%arg0: i32) -> (i32, i32) {
    %c0_i32 = arith.constant 0 : i32
    %c0_i32_0 = arith.constant 0 : i32
    %c0_i32_1 = arith.constant 0 : i32
    return %c0_i32, %c0_i32_0 : i32, i32
  }
  func.func @transform_7(%arg0: i32) -> (i32, i32) {
    %c0_i32 = arith.constant 0 : i32
    %c0_i32_0 = arith.constant 0 : i32
    %c0_i32_1 = arith.constant 0 : i32
    return %c0_i32, %c0_i32_0 : i32, i32
  }
  func.func @transform_8(%arg0: i32) -> (i32, i32) {
    %c0_i32 = arith.constant 0 : i32
    %c0_i32_0 = arith.constant 0 : i32
    %c0_i32_1 = arith.constant 0 : i32
    return %c0_i32, %c0_i32_0 : i32, i32
  }
  func.func @transform_9(%arg0: i32) -> (i32, i32) {
    %c0_i32 = arith.constant 0 : i32
    %c0_i32_0 = arith.constant 0 : i32
    return %arg0, %c0_i32 : i32, i32
  }
}

</mosaic_0001>

<bundles_post_ra>
// kernel: tpu_custom_call.1
= control target key start
LH: loop header
LB: loop body
LE: loop exit
PB: predicated region body
PF: predicated region fallthrough
CT: control target
= control target key end

     0   :  { %s1653_s30 = smov 0   ;;  %s1830_s0 = inlined_call_operand.vmem [shape: f32[256,50], index: 0, kind: input, shape index: {}]   ;;  %s1831_s1 = inlined_call_operand.vmem [shape: bf16[50,64], index: 1, kind: input, shape index: {}]   ;;  %s1832_s2 = inlined_call_operand.vmem [shape: f32[1,64], index: 2, kind: input, shape index: {}]   ;;  %s1833_s3 = inlined_call_operand.vmem [shape: bf16[64,32], index: 3, kind: input, shape index: {}]   ;;  %s1834_s4 = inlined_call_operand.vmem [shape: f32[1,32], index: 4, kind: input, shape index: {}]   ;;  %s1835_s5 = inlined_call_operand.vmem [shape: bf16[32,64], index: 5, kind: input, shape index: {}]   ;;  %s1836_s6 = inlined_call_operand.vmem [shape: f32[1,64], index: 6, kind: input, shape index: {}]   ;;  %s1837_s7 = inlined_call_operand.vmem [shape: bf16[64,50], index: 7, kind: input, shape index: {}]   ;;  %s1838_s8 = inlined_call_operand.vmem [shape: f32[1,50], index: 8, kind: input, shape index: {}]   ;;  %s1839_s9 = inlined_call_operand.vmem [shape: bf16[256,50], index: 9, kind: output, shape index: {}]  }
   0x1 LB: > { %s1277_s10 = sadd.s32 4294967295, %s1601_s30   ;;  %p1281_p0 = scmp.ge.s32.totalorder %s1601_s30, 1  ;;  %s1601_s30 = sphi %s1653_s30, %s19_s30  }
   0x2   : > { %p288_p1 = scmp.lt.s32.totalorder %s1601_s30, 3 }
   0x4   : > { %p289_p2 = pnand %p1281_p0, %p288_p1 }
   0x5   : > { %v1517_v0 = vld [vmem:[%s1831_s1] sm:$0xff] (!%p289_p2)   ;;  %v1518_v1 = vld [vmem:[%s1831_s1 + $0x8] sm:$0xff] (!%p289_p2)   ;;  %s1282_s15 = sshll.u32 (!%p289_p2), %s1277_s10, 4  ;;  %v1519_v2 = vld [vmem:[%s1831_s1 + $0x10] sm:$0xff] (!%p289_p2)   ;;  %vm396_vm0 = vcmask (!%p289_p2), 408576   ;;  %vm421_vm1 = vcmask (!%p289_p2), 1040384  }
   0x6   : > { %292 = sbr.rel (%p289_p2) target bundleno = 961 (0x3c1), region = 56  ;;  %1416 = vmatprep.subr.bf16.mxu0 (!%p289_p2), %v1517_v0  ;;  %p325_p3 = scmp.lt.s32.totalorder (!%p289_p2), %s1282_s15, 31  ;;  %v1521_v3 = vld [vmem:[%s1833_s3] sm:$0xff] (!%p289_p2)   ;;  %v1522_v4 = vld [vmem:[%s1833_s3 + $0x8] sm:$0xff] (!%p289_p2)   ;;  %v1523_v31 = vld [vmem:[%s1833_s3 + $0x10] sm:$0xff] (!%p289_p2)   ;;  %vm585_vm2 = vcmask (!%p289_p2), 523264  }
   0x7   : > { %1417 = vmatpush3.bf16.msra.mxu0 (!%p289_p2), %v1517_v0  ;;  %1440 = vmatprep.subr.bf16.mxu1 (!%p289_p2), %v1521_v3  ;;  %v1520_v5 = vld [vmem:[%s1831_s1 + $0x18] ss:$0 sps:$4 sm:$0x11] (!%p289_p2)   ;;  %v1525_v33 = vld [vmem:[%s1835_s5] sm:$0xff] (!%p289_p2)   ;;  %v1526_v34 = vld [vmem:[%s1835_s5 + $0x8] sm:$0xff] (!%p289_p2)   ;;  %vm754_vm3 = vcmask (!%p289_p2), 261120  }
   0x8   : > { %1418 = vmatprep.subr.bf16.mxu0 (!%p289_p2), %v1518_v1  ;;  %1441 = vmatpush3.bf16.msra.mxu1 (!%p289_p2), %v1521_v3  ;;  %v423_v11 = vsel (!%p289_p2), %vm421_vm1, %v1520_v5, 0  ;;  %v1524_v32 = vld [vmem:[%s1833_s3 + $0x18] sm:$0xff] (!%p289_p2)   ;;  %v1286_v35 = vld [vmem:[%s1832_s2] ss:$0 sm:$0xff] (!%p289_p2)  ;;  %vm1204_vm4 = vcmask (!%p289_p2), 404480  }
   0x9   : > { %1442 = vmatprep.subr.bf16.mxu1 (!%p289_p2), %v1522_v4 }
   0xb   : > { %1419 = vmatpush3.bf16.msra.mxu0 (!%p289_p2), %v1518_v1 }
   0xc   : > { %1420 = vmatprep.subr.bf16.mxu0 (!%p289_p2), %v1519_v2  ;;  %1443 = vmatpush3.bf16.msra.mxu1 (!%p289_p2), %v1522_v4 }
   0xd   : > { %s1841_s15 = smov (!%p325_p3, %s1282_s15), 31  ;;  %1444 = vmatprep.subr.bf16.mxu1 %v1523_v31 }
   0xe   : > { %s1283_s22 = sshll.u32 %s1841_s15, 3  ;;  %s1285_s13 = sshll.u32 %s1841_s15, 2 }
   0xf   : > { %s1682_s25 = scalar_lea.vmem %s1830_s0, %s1283_s22  ;;  %1421 = vmatpush3.bf16.msra.mxu0 %v1519_v2  ;;  %s1793_s15 = scalar_lea.vmem %s1839_s9, %s1285_s13 }
  0x10   : > { %v337_v6 = vld [vmem:[%s1682_s25] sm:$0xff]  ;;  %v338_v7 = vld [vmem:[%s1682_s25 + $0x8] sm:$0xff]  ;;  %v339_v9 = vld [vmem:[%s1682_s25 + $0x10] sm:$0xff]  ;;  %1508 = vmatprep.subr.msk.bf16.mxu0 %vm421_vm1, %v1520_v5  ;;  %1445 = vmatpush3.bf16.msra.mxu1 %v1523_v31 }
  0x11   : > { %v353_v8 = vpack.c.bf16 %v338_v7, %v337_v6  ;;  %v340_v10 = vld [vmem:[%s1682_s25 + $0x18] sm:$0xff]  ;;  %v341_v12 = vld [vmem:[%s1682_s25 + $0x20] sm:$0xff]  ;;  %v342_v13 = vld [vmem:[%s1682_s25 + $0x28] sm:$0xff]  ;;  %1446 = vmatprep.subr.bf16.mxu1 %v1524_v32 }
  0x12   : > { %v354_v14 = vpack.c.bf16 %v340_v10, %v339_v9  ;;  %v355_v15 = vpack.c.bf16 %v342_v13, %v341_v12  ;;  %v343_v16 = vld [vmem:[%s1682_s25 + $0x30] sm:$0xff]  ;;  %v344_v17 = vld [vmem:[%s1682_s25 + $0x38] sm:$0xff]  ;;  %v345_v18 = vld [vmem:[%s1682_s25 + $0x40] sm:$0xff] }
  0x13   : > { %1424 = vmatprep.mubr.msk.bf16.mxu0 %vm396_vm0, %v353_v8  ;;  %1423 = vmatpush3.bf16.msra.mxu0 %v423_v11  ;;  %v346_v19 = vld [vmem:[%s1682_s25 + $0x48] sm:$0xff]  ;;  %v356_v20 = vpack.c.bf16 %v344_v17, %v343_v16  ;;  %v347_v22 = vld [vmem:[%s1682_s25 + $0x50] sm:$0xff]  ;;  %v348_v23 = vld [vmem:[%s1682_s25 + $0x58] sm:$0xff] }
  0x14   : > { %v357_v21 = vpack.c.bf16 %v346_v19, %v345_v18  ;;  %v349_v24 = vld [vmem:[%s1682_s25 + $0x60] sm:$0xff]  ;;  %v350_v25 = vld [vmem:[%s1682_s25 + $0x68] sm:$0xff]  ;;  %v358_v26 = vpack.c.bf16 %v348_v23, %v347_v22  ;;  %v351_v28 = vld [vmem:[%s1682_s25 + $0x70] sm:$0xff]  ;;  %1447 = vmatpush3.bf16.msra.mxu1 %v1524_v32  ;;  %1464 = vmatprep.subr.bf16.mxu0 %v1525_v33 }
  0x15   : > { %v359_v27 = vpack.c.bf16 %v350_v25, %v349_v24  ;;  %v352_v29 = vld [vmem:[%s1682_s25 + $0x78] sm:$0xff]  ;;  %v1299_v31 = vld [vmem:[%s1834_s4] ss:$0 sm:$0xff] }
  0x16   : > { %1425 = vmatmul.mubr.msk.bf16.vlgmr.msra.gmra.mrb[0].mxu0 %vm396_vm0, %v354_v14  ;;  %v360_v30 = vpack.c.bf16 %v352_v29, %v351_v28  ;;  %v1527_v28 = vld [vmem:[%s1837_s7] sm:$0xff]   ;;  %v1528_v29 = vld [vmem:[%s1837_s7 + $0x8] sm:$0xff]  }
  0x17   : > { %1428 = vmatprep.mubr.msk.bf16.mxu0 %vm396_vm0, %v355_v15  ;;  %1465 = vmatpush3.bf16.msra.mxu0 %v1525_v33 }
  0x18   : > { %1466 = vmatprep.subr.bf16.mxu0 %v1526_v34  ;;  %1484 = vmatprep.subr.bf16.mxu1 %v1527_v28 }
  0x1b   : > { %1467 = vmatpush3.bf16.msra.mxu0 %v1526_v34 }
  0x1e   : > { %1429 = vmatmul.mubr.msk.bf16.gmra.mrb[4].mxu0 %vm396_vm0, %v356_v20 }
  0x1f   : > { %1432 = vmatprep.mubr.msk.bf16.mxu0 %vm396_vm0, %v357_v21 }
  0x26   : > { %1433 = vmatmul.mubr.msk.bf16.gmra.mrb[8].mxu0 %vm396_vm0, %v358_v26 }
  0x27   : > { %1436 = vmatprep.mubr.msk.bf16.mxu0 %vm396_vm0, %v359_v27 }
  0x2e   : > { %1437 = vmatmul.mubr.msk.bf16.gmra.mrb[12].mxu0 %vm396_vm0, %v360_v30  ;;  %v1529_v30 = vld [vmem:[%s1837_s7 + $0x10] sm:$0xff]  }
  0xe9   : > { %v1426_v36 = vpop.f32.mrb[0].mxu0 }
  0xea   : > { %v468_v37 = vadd.f32 %v1426_v36, %v1286_v35  ;;  %v459_v38 = vpop.f32.mrb[1].mxu0 }
  0xeb   : > { %v460_v39 = vadd.f32 %v1286_v35, %v459_v38  ;;  %v1427_v40 = vpop.f32.mrb[2].mxu0 }
  0xec   : > { %v471_v41 = vadd.f32 %v1427_v40, %v1286_v35  ;;  %v462_v42 = vpop.f32.mrb[3].mxu0  ;;  %v524_v44 = vmax.f32 %v468_v37, 0.0 }
  0xed   : > { %v463_v43 = vadd.f32 %v1286_v35, %v462_v42  ;;  %v522_v46 = vmax.f32 %v460_v39, 0.0 }
  0xee   : > { %v525_v45 = vmax.f32 %v471_v41, 0.0 }
  0xef   : > { %v523_v47 = vmax.f32 %v463_v43, 0.0 }
  0xf0   : > { %v539_v48 = vpack.c.bf16 %v525_v45, %v524_v44 }
  0xf1   : > { %v1430_v49 = vpop.f32.mrb[4].mxu0  ;;  %v538_v50 = vpack.c.bf16 %v523_v47, %v522_v46 }
  0xf2   : > { %v484_v51 = vadd.f32 %v1430_v49, %v1286_v35  ;;  %v475_v52 = vpop.f32.mrb[5].mxu0 }
  0xf3   : > { %v476_v53 = vadd.f32 %v1286_v35, %v475_v52  ;;  %v1431_v54 = vpop.f32.mrb[6].mxu0  ;;  %1448 = vmatprep.mubr.msk.bf16.mxu1 %vm585_vm2, %v538_v50 }
  0xf4   : > { %v487_v55 = vadd.f32 %v1431_v54, %v1286_v35  ;;  %v478_v56 = vpop.f32.mrb[7].mxu0  ;;  %1449 = vmatmul.mubr.msk.bf16.vlgmr.msra.gmra.mrb[0].mxu1 %vm585_vm2, %v539_v48  ;;  %v528_v58 = vmax.f32 %v484_v51, 0.0 }
  0xf5   : > { %v479_v57 = vadd.f32 %v1286_v35, %v478_v56  ;;  %v526_v60 = vmax.f32 %v476_v53, 0.0  ;;  %1485 = vmatpush3.bf16.msra.mxu1 %v1527_v28 }
  0xf6   : > { %v529_v59 = vmax.f32 %v487_v55, 0.0  ;;  %1486 = vmatprep.subr.bf16.mxu1 %v1528_v29 }
  0xf7   : > { %v527_v61 = vmax.f32 %v479_v57, 0.0 }
  0xf8   : > { %v541_v62 = vpack.c.bf16 %v529_v59, %v528_v58 }
  0xf9   : > { %v540_v63 = vpack.c.bf16 %v527_v61, %v526_v60  ;;  %v1434_v0 = vpop.f32.mrb[8].mxu0  ;;  %1487 = vmatpush3.bf16.msra.mxu1 %v1528_v29 }
  0xfa   : > { %v500_v1 = vadd.f32 %v1434_v0, %v1286_v35  ;;  %v491_v2 = vpop.f32.mrb[9].mxu0  ;;  %1488 = vmatprep.subr.bf16.mxu1 %v1529_v30 }
  0xfb   : > { %v492_v3 = vadd.f32 %v1286_v35, %v491_v2  ;;  %v1435_v4 = vpop.f32.mrb[10].mxu0  ;;  %1452 = vmatprep.mubr.msk.bf16.mxu1 %vm585_vm2, %v540_v63 }
  0xfc   : > { %v503_v5 = vadd.f32 %v1435_v4, %v1286_v35  ;;  %v494_v6 = vpop.f32.mrb[11].mxu0  ;;  %1453 = vmatmul.mubr.msk.bf16.gmra.mrb[4].mxu1 %vm585_vm2, %v541_v62  ;;  %v532_v8 = vmax.f32 %v500_v1, 0.0 }
  0xfd   : > { %v495_v7 = vadd.f32 %v1286_v35, %v494_v6  ;;  %v530_v10 = vmax.f32 %v492_v3, 0.0  ;;  %1489 = vmatpush3.bf16.msra.mxu1 %v1529_v30 }
  0xfe   : > { %v533_v9 = vmax.f32 %v503_v5, 0.0 }
  0xff   : > { %v531_v11 = vmax.f32 %v495_v7, 0.0 }
 0x100   : > { %v543_v12 = vpack.c.bf16 %v533_v9, %v532_v8 }
 0x101   : > { %v542_v13 = vpack.c.bf16 %v531_v11, %v530_v10  ;;  %v1438_v14 = vpop.f32.mrb[12].mxu0 }
 0x102   : > { %v516_v15 = vadd.f32 %v1438_v14, %v1286_v35  ;;  %v507_v16 = vpop.f32.mrb[13].mxu0 }
 0x103   : > { %v508_v17 = vadd.f32 %v1286_v35, %v507_v16  ;;  %v1439_v18 = vpop.f32.mrb[14].mxu0  ;;  %1456 = vmatprep.mubr.msk.bf16.mxu1 %vm585_vm2, %v542_v13 }
 0x104   : > { %v519_v19 = vadd.f32 %v1439_v18, %v1286_v35  ;;  %v510_v20 = vpop.f32.mrb[15].mxu0  ;;  %1457 = vmatmul.mubr.msk.bf16.gmra.mrb[8].mxu1 %vm585_vm2, %v543_v12  ;;  %v536_v22 = vmax.f32 %v516_v15, 0.0 }
 0x105   : > { %v511_v21 = vadd.f32 %v1286_v35, %v510_v20  ;;  %v534_v24 = vmax.f32 %v508_v17, 0.0 }
 0x106   : > { %v537_v23 = vmax.f32 %v519_v19, 0.0 }
 0x107   : > { %v535_v25 = vmax.f32 %v511_v21, 0.0 }
 0x108   : > { %v545_v26 = vpack.c.bf16 %v537_v23, %v536_v22 }
 0x109   : > { %v544_v27 = vpack.c.bf16 %v535_v25, %v534_v24  ;;  %v1530_v24 = vld [vmem:[%s1837_s7 + $0x18] sm:$0xff]   ;;  %v1312_v25 = vld [vmem:[%s1836_s6] ss:$0 sm:$0xff] }
 0x10a   : > { %1490 = vmatprep.subr.bf16.mxu1 %v1530_v24 }
 0x10b   : > { %1460 = vmatprep.mubr.msk.bf16.mxu1 %vm585_vm2, %v544_v27  ;;  %1491 = vmatpush3.bf16.msra.mxu1 %v1530_v24 }
 0x10c   : > { %1461 = vmatmul.mubr.msk.bf16.gmra.mrb[12].mxu1 %vm585_vm2, %v545_v26 }
 0x1c7   : > { %v1450_v32 = vpop.f32.mrb[0].mxu1 }
 0x1c8   : > { %v653_v33 = vadd.f32 %v1450_v32, %v1299_v31  ;;  %v644_v34 = vpop.f32.mrb[1].mxu1 }
 0x1c9   : > { %v645_v35 = vadd.f32 %v1299_v31, %v644_v34  ;;  %v1451_v36 = vpop.f32.mrb[2].mxu1 }
 0x1ca   : > { %v656_v37 = vadd.f32 %v1451_v36, %v1299_v31  ;;  %v647_v38 = vpop.f32.mrb[3].mxu1  ;;  %v709_v40 = vmax.f32 %v653_v33, 0.0 }
 0x1cb   : > { %v648_v39 = vadd.f32 %v1299_v31, %v647_v38  ;;  %v707_v42 = vmax.f32 %v645_v35, 0.0 }
 0x1cc   : > { %v710_v41 = vmax.f32 %v656_v37, 0.0 }
 0x1cd   : > { %v708_v43 = vmax.f32 %v648_v39, 0.0 }
 0x1ce   : > { %v724_v44 = vpack.c.bf16 %v710_v41, %v709_v40 }
 0x1cf   : > { %v723_v45 = vpack.c.bf16 %v708_v43, %v707_v42  ;;  %v1454_v46 = vpop.f32.mrb[4].mxu1 }
 0x1d0   : > { %v669_v47 = vadd.f32 %v1454_v46, %v1299_v31  ;;  %v660_v48 = vpop.f32.mrb[5].mxu1 }
 0x1d1   : > { %v661_v49 = vadd.f32 %v1299_v31, %v660_v48  ;;  %v1455_v50 = vpop.f32.mrb[6].mxu1  ;;  %1468 = vmatprep.mubr.msk.bf16.mxu0 %vm754_vm3, %v723_v45 }
 0x1d2   : > { %v672_v51 = vadd.f32 %v1455_v50, %v1299_v31  ;;  %v663_v52 = vpop.f32.mrb[7].mxu1  ;;  %1469 = vmatmul.mubr.msk.bf16.vlgmr.msra.gmra.mrb[16].mxu0 %vm754_vm3, %v724_v44  ;;  %v713_v54 = vmax.f32 %v669_v47, 0.0 }
 0x1d3   : > { %v664_v53 = vadd.f32 %v1299_v31, %v663_v52  ;;  %v711_v56 = vmax.f32 %v661_v49, 0.0 }
 0x1d4   : > { %v714_v55 = vmax.f32 %v672_v51, 0.0 }
 0x1d5   : > { %v712_v57 = vmax.f32 %v664_v53, 0.0 }
 0x1d6   : > { %v726_v58 = vpack.c.bf16 %v714_v55, %v713_v54 }
 0x1d7   : > { %v725_v59 = vpack.c.bf16 %v712_v57, %v711_v56  ;;  %v1458_v60 = vpop.f32.mrb[8].mxu1 }
 0x1d8   : > { %v685_v61 = vadd.f32 %v1458_v60, %v1299_v31  ;;  %v676_v62 = vpop.f32.mrb[9].mxu1 }
 0x1d9   : > { %v677_v63 = vadd.f32 %v1299_v31, %v676_v62  ;;  %v1459_v0 = vpop.f32.mrb[10].mxu1  ;;  %1472 = vmatprep.mubr.msk.bf16.mxu0 %vm754_vm3, %v725_v59 }
 0x1da   : > { %v688_v1 = vadd.f32 %v1459_v0, %v1299_v31  ;;  %v679_v2 = vpop.f32.mrb[11].mxu1  ;;  %1473 = vmatmul.mubr.msk.bf16.gmra.mrb[20].mxu0 %vm754_vm3, %v726_v58  ;;  %v717_v4 = vmax.f32 %v685_v61, 0.0 }
 0x1db   : > { %v680_v3 = vadd.f32 %v1299_v31, %v679_v2  ;;  %v715_v6 = vmax.f32 %v677_v63, 0.0 }
 0x1dc   : > { %v718_v5 = vmax.f32 %v688_v1, 0.0 }
 0x1dd   : > { %v716_v7 = vmax.f32 %v680_v3, 0.0 }
 0x1de   : > { %v728_v8 = vpack.c.bf16 %v718_v5, %v717_v4 }
 0x1df   : > { %v727_v9 = vpack.c.bf16 %v716_v7, %v715_v6  ;;  %v1462_v10 = vpop.f32.mrb[12].mxu1 }
 0x1e0   : > { %v701_v11 = vadd.f32 %v1462_v10, %v1299_v31  ;;  %v692_v12 = vpop.f32.mrb[13].mxu1 }
 0x1e1   : > { %v693_v13 = vadd.f32 %v1299_v31, %v692_v12  ;;  %v1463_v14 = vpop.f32.mrb[14].mxu1  ;;  %1476 = vmatprep.mubr.msk.bf16.mxu0 %vm754_vm3, %v727_v9 }
 0x1e2   : > { %v704_v15 = vadd.f32 %v1463_v14, %v1299_v31  ;;  %v695_v16 = vpop.f32.mrb[15].mxu1  ;;  %1477 = vmatmul.mubr.msk.bf16.gmra.mrb[24].mxu0 %vm754_vm3, %v728_v8  ;;  %v721_v18 = vmax.f32 %v701_v11, 0.0 }
 0x1e3   : > { %v696_v17 = vadd.f32 %v1299_v31, %v695_v16  ;;  %v719_v20 = vmax.f32 %v693_v13, 0.0 }
 0x1e4   : > { %v722_v19 = vmax.f32 %v704_v15, 0.0 }
 0x1e5   : > { %v720_v21 = vmax.f32 %v696_v17, 0.0 }
 0x1e6   : > { %v730_v22 = vpack.c.bf16 %v722_v19, %v721_v18  ;;  %v1771_v18 = vld [vmem:[%s1838_s8] ss:$0 sm:$0xff] }
 0x1e7   : > { %v729_v23 = vpack.c.bf16 %v720_v21, %v719_v20 }
 0x1e9   : > { %1480 = vmatprep.mubr.msk.bf16.mxu0 %vm754_vm3, %v729_v23 }
 0x1ea   : > { %1481 = vmatmul.mubr.msk.bf16.gmra.mrb[28].mxu0 %vm754_vm3, %v730_v22 }
 0x2a5   : > { %v1470_v26 = vpop.f32.mrb[16].mxu0 }
 0x2a6   : > { %v822_v27 = vadd.f32 %v1470_v26, %v1312_v25  ;;  %v813_v28 = vpop.f32.mrb[17].mxu0 }
 0x2a7   : > { %v814_v29 = vadd.f32 %v1312_v25, %v813_v28  ;;  %v1471_v30 = vpop.f32.mrb[18].mxu0 }
 0x2a8   : > { %v825_v31 = vadd.f32 %v1471_v30, %v1312_v25  ;;  %v816_v32 = vpop.f32.mrb[19].mxu0  ;;  %v878_v34 = vmax.f32 %v822_v27, 0.0 }
 0x2a9   : > { %v817_v33 = vadd.f32 %v1312_v25, %v816_v32  ;;  %v876_v36 = vmax.f32 %v814_v29, 0.0 }
 0x2aa   : > { %v879_v35 = vmax.f32 %v825_v31, 0.0 }
 0x2ab   : > { %v877_v37 = vmax.f32 %v817_v33, 0.0 }
 0x2ac   : > { %v893_v38 = vpack.c.bf16 %v879_v35, %v878_v34 }
 0x2ad   : > { %v892_v39 = vpack.c.bf16 %v877_v37, %v876_v36  ;;  %v1474_v40 = vpop.f32.mrb[20].mxu0 }
 0x2ae   : > { %v838_v41 = vadd.f32 %v1474_v40, %v1312_v25  ;;  %v829_v42 = vpop.f32.mrb[21].mxu0 }
 0x2af   : > { %v830_v43 = vadd.f32 %v1312_v25, %v829_v42  ;;  %v1475_v44 = vpop.f32.mrb[22].mxu0  ;;  %1492 = vmatprep.mubr.msk.bf16.mxu1 %vm585_vm2, %v892_v39 }
 0x2b0   : > { %v841_v45 = vadd.f32 %v1475_v44, %v1312_v25  ;;  %v832_v46 = vpop.f32.mrb[23].mxu0  ;;  %1493 = vmatmul.mubr.msk.bf16.vlgmr.msra.gmra.mrb[16].mxu1 %vm585_vm2, %v893_v38  ;;  %v882_v48 = vmax.f32 %v838_v41, 0.0 }
 0x2b1   : > { %v833_v47 = vadd.f32 %v1312_v25, %v832_v46  ;;  %v880_v50 = vmax.f32 %v830_v43, 0.0 }
 0x2b2   : > { %v883_v49 = vmax.f32 %v841_v45, 0.0 }
 0x2b3   : > { %v881_v51 = vmax.f32 %v833_v47, 0.0 }
 0x2b4   : > { %v895_v52 = vpack.c.bf16 %v883_v49, %v882_v48 }
 0x2b5   : > { %v894_v53 = vpack.c.bf16 %v881_v51, %v880_v50  ;;  %v1478_v54 = vpop.f32.mrb[24].mxu0 }
 0x2b6   : > { %v854_v55 = vadd.f32 %v1478_v54, %v1312_v25  ;;  %v845_v56 = vpop.f32.mrb[25].mxu0 }
 0x2b7   : > { %v846_v57 = vadd.f32 %v1312_v25, %v845_v56  ;;  %v1479_v58 = vpop.f32.mrb[26].mxu0  ;;  %1496 = vmatprep.mubr.msk.bf16.mxu1 %vm585_vm2, %v894_v53 }
 0x2b8   : > { %v857_v59 = vadd.f32 %v1479_v58, %v1312_v25  ;;  %v848_v60 = vpop.f32.mrb[27].mxu0  ;;  %1497 = vmatmul.mubr.msk.bf16.gmra.mrb[20].mxu1 %vm585_vm2, %v895_v52  ;;  %v886_v62 = vmax.f32 %v854_v55, 0.0 }
 0x2b9   : > { %v849_v61 = vadd.f32 %v1312_v25, %v848_v60  ;;  %v884_v0 = vmax.f32 %v846_v57, 0.0 }
 0x2ba   : > { %v887_v63 = vmax.f32 %v857_v59, 0.0 }
 0x2bb   : > { %v885_v1 = vmax.f32 %v849_v61, 0.0 }
 0x2bc   : > { %v897_v2 = vpack.c.bf16 %v887_v63, %v886_v62 }
 0x2bd   : > { %v896_v3 = vpack.c.bf16 %v885_v1, %v884_v0  ;;  %v1482_v4 = vpop.f32.mrb[28].mxu0 }
 0x2be   : > { %v870_v5 = vadd.f32 %v1482_v4, %v1312_v25  ;;  %v861_v6 = vpop.f32.mrb[29].mxu0 }
 0x2bf   : > { %v862_v7 = vadd.f32 %v1312_v25, %v861_v6  ;;  %v1483_v8 = vpop.f32.mrb[30].mxu0  ;;  %1500 = vmatprep.mubr.msk.bf16.mxu1 %vm585_vm2, %v896_v3 }
 0x2c0   : > { %v873_v9 = vadd.f32 %v1483_v8, %v1312_v25  ;;  %v864_v10 = vpop.f32.mrb[31].mxu0  ;;  %1501 = vmatmul.mubr.msk.bf16.gmra.mrb[24].mxu1 %vm585_vm2, %v897_v2  ;;  %v890_v12 = vmax.f32 %v870_v5, 0.0 }
 0x2c1   : > { %v865_v11 = vadd.f32 %v1312_v25, %v864_v10  ;;  %v888_v14 = vmax.f32 %v862_v7, 0.0 }
 0x2c2   : > { %v891_v13 = vmax.f32 %v873_v9, 0.0 }
 0x2c3   : > { %v889_v15 = vmax.f32 %v865_v11, 0.0 }
 0x2c4   : > { %v899_v16 = vpack.c.bf16 %v891_v13, %v890_v12 }
 0x2c5   : > { %v898_v17 = vpack.c.bf16 %v889_v15, %v888_v14 }
 0x2c7   : > { %1504 = vmatprep.mubr.msk.bf16.mxu1 %vm585_vm2, %v898_v17 }
 0x2c8   : > { %1505 = vmatmul.mubr.msk.bf16.gmra.mrb[28].mxu1 %vm585_vm2, %v899_v16 }
 0x383   : > { %v1494_v19 = vpop.f32.mrb[16].mxu1 }
 0x384   : > { %v1006_v20 = vadd.f32 %v1494_v19, %v1771_v18  ;;  %v997_v21 = vpop.f32.mrb[17].mxu1 }
 0x385   : > { %v998_v22 = vadd.f32 %v1771_v18, %v997_v21  ;;  %v1495_v23 = vpop.f32.mrb[18].mxu1 }
 0x386   : > { %v1062_v24 = vsub.f32 0.0, %v1006_v20  ;;  %v1009_v25 = vadd.f32 %v1495_v23, %v1771_v18  ;;  %v1000_v26 = vpop.f32.mrb[19].mxu1 }
 0x387   : > { %v1060_v27 = vsub.f32 0.0, %v998_v22  ;;  %v1001_v28 = vadd.f32 %v1771_v18, %v1000_v26 }
 0x388   : > { %v1080_v29 = vmul.f32 1.442695, %v1062_v24  ;;  %v1063_v30 = vsub.f32 0.0, %v1009_v25 }
 0x389   : > { %v1076_v31 = vmul.f32 1.442695, %v1060_v27  ;;  %v1061_v32 = vsub.f32 0.0, %v1001_v28 }
 0x38a   : > { %1531 = vpow2.f32 %v1080_v29  ;;  %v1082_v33 = vmul.f32 1.442695, %v1063_v30 }
 0x38b   : > { %1533 = vpow2.f32 %v1076_v31  ;;  %v1078_v34 = vmul.f32 1.442695, %v1061_v32  ;;  %v1498_v35 = vpop.f32.mrb[20].mxu1 }
 0x38c   : > { %1535 = vpow2.f32 %v1082_v33  ;;  %v1022_v36 = vadd.f32 %v1498_v35, %v1771_v18  ;;  %v1013_v37 = vpop.f32.mrb[21].mxu1 }
 0x38d   : > { %1537 = vpow2.f32 %v1078_v34  ;;  %v1014_v38 = vadd.f32 %v1771_v18, %v1013_v37  ;;  %v1499_v39 = vpop.f32.mrb[22].mxu1 }
 0x38e   : > { %v1066_v40 = vsub.f32 0.0, %v1022_v36  ;;  %v1025_v41 = vadd.f32 %v1499_v39, %v1771_v18  ;;  %v1016_v42 = vpop.f32.mrb[23].mxu1 }
 0x38f   : > { %v1064_v43 = vsub.f32 0.0, %v1014_v38  ;;  %v1017_v44 = vadd.f32 %v1771_v18, %v1016_v42 }
 0x390   : > { %v1088_v45 = vmul.f32 1.442695, %v1066_v40  ;;  %v1067_v46 = vsub.f32 0.0, %v1025_v41 }
 0x391   : > { %v1084_v47 = vmul.f32 1.442695, %v1064_v43  ;;  %v1065_v48 = vsub.f32 0.0, %v1017_v44 }
 0x392   : > { %1539 = vpow2.f32 %v1088_v45  ;;  %v1090_v49 = vmul.f32 1.442695, %v1067_v46 }
 0x393   : > { %1541 = vpow2.f32 %v1084_v47  ;;  %v1086_v50 = vmul.f32 1.442695, %v1065_v48  ;;  %v1502_v51 = vpop.f32.mrb[24].mxu1 }
 0x394   : > { %v1532_v52 = vpop.eup %1531  ;;  %1543 = vpow2.f32 %v1090_v49  ;;  %v1038_v53 = vadd.f32 %v1502_v51, %v1771_v18  ;;  %v1029_v54 = vpop.f32.mrb[25].mxu1 }
 0x395   : > { %v1534_v55 = vpop.eup %1533  ;;  %v1110_v56 = vadd.f32 1.0, %v1532_v52  ;;  %1545 = vpow2.f32 %v1086_v50  ;;  %v1030_v57 = vadd.f32 %v1771_v18, %v1029_v54  ;;  %v1503_v58 = vpop.f32.mrb[26].mxu1 }
 0x396   : > { %v1536_v59 = vpop.eup %1535  ;;  %v1108_v60 = vadd.f32 1.0, %v1534_v55  ;;  %v1070_v61 = vsub.f32 0.0, %v1038_v53  ;;  %v1041_v62 = vadd.f32 %v1503_v58, %v1771_v18  ;;  %v1032_v63 = vpop.f32.mrb[27].mxu1 }
 0x397   : > { %v1538_v0 = vpop.eup %1537  ;;  %1547 = vrcp.f32 %v1110_v56  ;;  %v1111_v1 = vadd.f32 1.0, %v1536_v59  ;;  %v1068_v2 = vsub.f32 0.0, %v1030_v57  ;;  %v1033_v3 = vadd.f32 %v1771_v18, %v1032_v63 }
 0x398   : > { %1549 = vrcp.f32 %v1108_v60  ;;  %v1109_v4 = vadd.f32 1.0, %v1538_v0  ;;  %v1096_v5 = vmul.f32 1.442695, %v1070_v61  ;;  %v1071_v6 = vsub.f32 0.0, %v1041_v62 }
 0x399   : > { %1551 = vrcp.f32 %v1111_v1  ;;  %v1092_v7 = vmul.f32 1.442695, %v1068_v2  ;;  %v1069_v8 = vsub.f32 0.0, %v1033_v3 }
 0x39a   : > { %1553 = vrcp.f32 %v1109_v4  ;;  %v1098_v9 = vmul.f32 1.442695, %v1071_v6 }
 0x39b   : > { %1555 = vpow2.f32 %v1096_v5  ;;  %v1094_v10 = vmul.f32 1.442695, %v1069_v8  ;;  %v1506_v11 = vpop.f32.mrb[28].mxu1 }
 0x39c   : > { %v1540_v12 = vpop.eup %1539  ;;  %1557 = vpow2.f32 %v1092_v7  ;;  %v1054_v13 = vadd.f32 %v1506_v11, %v1771_v18  ;;  %v1045_v14 = vpop.f32.mrb[29].mxu1 }
 0x39d   : > { %v1542_v15 = vpop.eup %1541  ;;  %v1114_v16 = vadd.f32 1.0, %v1540_v12  ;;  %1559 = vpow2.f32 %v1098_v9  ;;  %v1046_v17 = vadd.f32 %v1771_v18, %v1045_v14  ;;  %v1507_v19 = vpop.f32.mrb[30].mxu1 }
 0x39e   : > { %v1544_v20 = vpop.eup %1543  ;;  %v1112_v21 = vadd.f32 1.0, %v1542_v15  ;;  %1561 = vpow2.f32 %v1094_v10  ;;  %v1074_v22 = vsub.f32 0.0, %v1054_v13  ;;  %v1057_v23 = vadd.f32 %v1507_v19, %v1771_v18  ;;  %v1048_v24 = vpop.f32.mrb[31].mxu1 }
 0x39f   : > { %v1546_v25 = vpop.eup %1545  ;;  %1563 = vrcp.f32 %v1114_v16  ;;  %v1115_v26 = vadd.f32 1.0, %v1544_v20  ;;  %v1072_v27 = vsub.f32 0.0, %v1046_v17  ;;  %v1049_v28 = vadd.f32 %v1771_v18, %v1048_v24 }
 0x3a0   : > { %1565 = vrcp.f32 %v1112_v21  ;;  %v1113_v29 = vadd.f32 1.0, %v1546_v25  ;;  %v1104_v30 = vmul.f32 1.442695, %v1074_v22  ;;  %v1075_v31 = vsub.f32 0.0, %v1057_v23 }
 0x3a1   : > { %v1548_v32 = vpop.eup %1547  ;;  %1567 = vrcp.f32 %v1115_v26  ;;  %v1100_v33 = vmul.f32 1.442695, %v1072_v27  ;;  %v1073_v34 = vsub.f32 0.0, %v1049_v28 }
 0x3a2   : > { %v1550_v35 = vpop.eup %1549  ;;  %v1356_v36 = vpack.c.bf16 %v1548_v32, %v1548_v32  ;;  %1569 = vrcp.f32 %v1113_v29  ;;  %v1106_v18 = vmul.f32 1.442695, %v1075_v31 }
 0x3a3   : > { %v1552_v37 = vpop.eup %1551  ;;  %v1354_v38 = vpack.c.bf16 %v1550_v35, %v1550_v35  ;;  %1571 = vpow2.f32 %v1104_v30  ;;  %v1102_v39 = vmul.f32 1.442695, %v1073_v34 }
 0x3a4   : > { %v1554_v40 = vpop.eup %1553  ;;  %1207 = vst.msk [vmem:[%s1793_s15 + $0x8] sm:$0xf] %vm1204_vm4, %v1356_v36  ;;  %v1357_v41 = vpack.c.bf16 %v1552_v37, %v1552_v37  ;;  %1573 = vpow2.f32 %v1100_v33 }
 0x3a5   : > { %v1556_v42 = vpop.eup %1555  ;;  %1205 = vst.msk [vmem:[%s1793_s15] sm:$0xf] %vm1204_vm4, %v1354_v38  ;;  %v1355_v43 = vpack.c.bf16 %v1554_v40, %v1554_v40  ;;  %1575 = vpow2.f32 %v1106_v18 }
 0x3a6   : > { %v1558_v44 = vpop.eup %1557  ;;  %1208 = vst.msk [vmem:[%s1793_s15 + $0xc] sm:$0xf] %vm1204_vm4, %v1357_v41  ;;  %v1118_v45 = vadd.f32 1.0, %v1556_v42  ;;  %1577 = vpow2.f32 %v1102_v39 }
 0x3a7   : > { %v1560_v46 = vpop.eup %1559  ;;  %1206 = vst.msk [vmem:[%s1793_s15 + $0x4] sm:$0xf] %vm1204_vm4, %v1355_v43  ;;  %v1116_v47 = vadd.f32 1.0, %v1558_v44 }
 0x3a8   : > { %v1562_v48 = vpop.eup %1561  ;;  %1579 = vrcp.f32 %v1118_v45  ;;  %v1119_v49 = vadd.f32 1.0, %v1560_v46 }
 0x3a9   : > { %v1564_v50 = vpop.eup %1563  ;;  %1581 = vrcp.f32 %v1116_v47  ;;  %v1117_v51 = vadd.f32 1.0, %v1562_v48 }
 0x3aa   : > { %v1566_v52 = vpop.eup %1565  ;;  %v1360_v53 = vpack.c.bf16 %v1564_v50, %v1564_v50  ;;  %1583 = vrcp.f32 %v1119_v49 }
 0x3ab   : > { %v1568_v54 = vpop.eup %1567  ;;  %v1358_v55 = vpack.c.bf16 %v1566_v52, %v1566_v52  ;;  %1585 = vrcp.f32 %v1117_v51 }
 0x3ac   : > { %v1570_v56 = vpop.eup %1569  ;;  %1211 = vst.msk [vmem:[%s1793_s15 + $0x18] sm:$0xf] %vm1204_vm4, %v1360_v53  ;;  %v1361_v57 = vpack.c.bf16 %v1568_v54, %v1568_v54 }
 0x3ad   : > { %v1572_v58 = vpop.eup %1571  ;;  %1209 = vst.msk [vmem:[%s1793_s15 + $0x10] sm:$0xf] %vm1204_vm4, %v1358_v55  ;;  %v1359_v59 = vpack.c.bf16 %v1570_v56, %v1570_v56 }
 0x3ae   : > { %v1574_v60 = vpop.eup %1573  ;;  %1212 = vst.msk [vmem:[%s1793_s15 + $0x1c] sm:$0xf] %vm1204_vm4, %v1361_v57  ;;  %v1122_v61 = vadd.f32 1.0, %v1572_v58 }
 0x3af   : > { %v1576_v62 = vpop.eup %1575  ;;  %1210 = vst.msk [vmem:[%s1793_s15 + $0x14] sm:$0xf] %vm1204_vm4, %v1359_v59  ;;  %v1120_v63 = vadd.f32 1.0, %v1574_v60 }
 0x3b0   : > { %v1578_v0 = vpop.eup %1577  ;;  %1587 = vrcp.f32 %v1122_v61  ;;  %v1123_v1 = vadd.f32 1.0, %v1576_v62 }
 0x3b1   : > { %1589 = vrcp.f32 %v1120_v63  ;;  %v1121_v2 = vadd.f32 1.0, %v1578_v0 }
 0x3b2   : > { %v1580_v3 = vpop.eup %1579  ;;  %1591 = vrcp.f32 %v1123_v1 }
 0x3b3   : > { %v1582_v4 = vpop.eup %1581  ;;  %v1364_v5 = vpack.c.bf16 %v1580_v3, %v1580_v3  ;;  %1593 = vrcp.f32 %v1121_v2 }
 0x3b4   : > { %v1584_v6 = vpop.eup %1583  ;;  %v1362_v7 = vpack.c.bf16 %v1582_v4, %v1582_v4 }
 0x3b5   : > { %v1586_v8 = vpop.eup %1585  ;;  %1215 = vst.msk [vmem:[%s1793_s15 + $0x28] sm:$0xf] %vm1204_vm4, %v1364_v5  ;;  %v1365_v9 = vpack.c.bf16 %v1584_v6, %v1584_v6 }
 0x3b6   : > { %1213 = vst.msk [vmem:[%s1793_s15 + $0x20] sm:$0xf] %vm1204_vm4, %v1362_v7  ;;  %v1363_v10 = vpack.c.bf16 %v1586_v8, %v1586_v8 }
 0x3b7   : > { %1216 = vst.msk [vmem:[%s1793_s15 + $0x2c] sm:$0xf] %vm1204_vm4, %v1365_v9 }
 0x3b8   : > { %1214 = vst.msk [vmem:[%s1793_s15 + $0x24] sm:$0xf] %vm1204_vm4, %v1363_v10 }
 0x3ba   : > { %v1588_v11 = vpop.eup %1587 }
 0x3bb   : > { %v1590_v12 = vpop.eup %1589  ;;  %v1368_v13 = vpack.c.bf16 %v1588_v11, %v1588_v11 }
 0x3bc   : > { %v1592_v14 = vpop.eup %1591  ;;  %v1366_v15 = vpack.c.bf16 %v1590_v12, %v1590_v12 }
 0x3bd   : > { %v1594_v16 = vpop.eup %1593  ;;  %1219 = vst.msk [vmem:[%s1793_s15 + $0x38] sm:$0xf] %vm1204_vm4, %v1368_v13  ;;  %v1369_v17 = vpack.c.bf16 %v1592_v14, %v1592_v14 }
 0x3be   : > { %1217 = vst.msk [vmem:[%s1793_s15 + $0x30] sm:$0xf] %vm1204_vm4, %v1366_v15  ;;  %v1367_v19 = vpack.c.bf16 %v1594_v16, %v1594_v16 }
 0x3bf   : > { %1220 = vst.msk [vmem:[%s1793_s15 + $0x3c] sm:$0xf] %vm1204_vm4, %v1369_v17 }
 0x3c0   : > { %1218 = vst.msk [vmem:[%s1793_s15 + $0x34] sm:$0xf] %vm1204_vm4, %v1367_v19 }
 0x3c1 PF: > { %s19_s30 = sadd.s32 1, %s1601_s30  }
 0x3c2   : > { %p16_p4 = scmp.ge.s32.totalorder %s19_s30, 4  }
 0x3c4   :  { %18 = sbr.rel (!%p16_p4) target bundleno = 1 (0x1), region = 86 }

</bundles_post_ra>
